<compile_context>
chip_gen: v6e
topology: v6e:2x2x1
jax: 0.10.0
libtpu: 0.0.40
codegen_flags: <defaults>
</compile_context>

<pallas_src>
import jax
import jax.numpy as jnp
from jax.experimental import pallas as pl
from jax.experimental.pallas import tpu as pltpu


_SMEM = pl.BlockSpec(memory_space=pltpu.MemorySpace.SMEM)


def _make_began_step(lambda_k, gamma, update_k):
    """Builds a jitted BEGAN step specialized for (lambda_k, gamma, update_k)."""
    lambda_k = float(lambda_k)
    gamma = float(gamma)
    update_k = bool(update_k)

    if update_k:
        def kernel(real_ref, fake_ref, k_ref, k_out_ref, conv_ref):
            real = real_ref[0]
            diff = gamma * real - fake_ref[0]
            conv_ref[0] = real + jnp.abs(diff)
            k_out_ref[0] = jnp.clip(k_ref[0] + lambda_k * diff, 0.0, 1.0)

        call = pl.pallas_call(
            kernel,
            out_shape=(
                jax.ShapeDtypeStruct((1,), jnp.float32),  # k_out
                jax.ShapeDtypeStruct((1,), jnp.float32),  # convergence
            ),
            in_specs=[_SMEM, _SMEM, _SMEM],
            out_specs=(_SMEM, _SMEM),
            input_output_aliases={2: 0},  # carry k in place
        )

        @jax.jit
        def step(real_dloss, fake_dloss, k):
            r = jnp.asarray(real_dloss, jnp.float32).reshape((1,))
            f = jnp.asarray(fake_dloss, jnp.float32).reshape((1,))
            kk = jnp.asarray(k, jnp.float32).reshape((1,))
            k_out, conv = call(r, f, kk)
            return k_out[0], conv[0]

        return step

    # update_k == False: k is untouched; don't route it through the kernel.
    def kernel(real_ref, fake_ref, conv_ref):
        real = real_ref[0]
        diff = gamma * real - fake_ref[0]
        conv_ref[0] = real + jnp.abs(diff)

    call = pl.pallas_call(
        kernel,
        out_shape=jax.ShapeDtypeStruct((1,), jnp.float32),
        in_specs=[_SMEM, _SMEM],
        out_specs=_SMEM,
    )

    @jax.jit
    def step(real_dloss, fake_dloss, k):
        r = jnp.asarray(real_dloss, jnp.float32).reshape((1,))
        f = jnp.asarray(fake_dloss, jnp.float32).reshape((1,))
        conv = call(r, f)
        return jnp.asarray(k, jnp.float32), conv[0]

    return step


class BEGANRecorder:
    """JAX/Pallas port of the PyTorch BEGANRecorder module.

    Unlike the PyTorch version (which returns `self.k.item()`), k is kept
    on-device to avoid a device->host sync every training step; call
    `float(recorder.k)` only when actually logging.
    """

    def __init__(self, lambda_k, init_k, gamma):
        self.lambda_k = float(lambda_k)
        self.gamma = float(gamma)
        # nn.Parameter(torch.tensor(init_k)) -> scalar parameter, on device
        self.k = jnp.asarray(init_k, jnp.float32)
        # Two specialized, pre-jitted step functions (constants baked in).
        self._step_update = _make_began_step(self.lambda_k, self.gamma, True)
        self._step_no_update = _make_began_step(self.lambda_k, self.gamma, False)

    def forward(self, real_dloss, fake_dloss, update_k=False):
        step = self._step_update if update_k else self._step_no_update
        k_new, convergence = step(real_dloss, fake_dloss, self.k)
        if update_k:
            # mirrors `self.k.data = clamp(...).data`
            self.k = k_new
        # mirrors `return (self.k.item(), convergence)` without a host sync.
        return self.k, convergence

    __call__ = forward


if __name__ == "__main__":
    key = jax.random.PRNGKey(0)
    k1, k2 = jax.random.split(key)

    # deterministic "discriminator loss" scalars
    real_dloss = jnp.abs(jax.random.normal(k1, (), jnp.float32))
    fake_dloss = jnp.abs(jax.random.normal(k2, (), jnp.float32))

    recorder = BEGANRecorder(lambda_k=0.001, init_k=0.0, gamma=1.0)

    # step 1: no k update
    k0, convergence0 = recorder(real_dloss, fake_dloss, update_k=False)
    jax.block_until_ready(convergence0)

    # step 2: with k update
    k1_dev, convergence1 = recorder(real_dloss, fake_dloss, update_k=True)
    jax.block_until_ready((k1_dev, convergence1))

    # step 3: another k update (exercises the carried / aliased k state)
    k2_dev, convergence2 = recorder(fake_dloss, real_dloss, update_k=True)
    jax.block_until_ready((k2_dev, convergence2))

    # --- pure-JAX reference ---------------------------------------------
    def ref_step(real, fake, k, lambda_k, gamma, update_k):
        diff = gamma * real - fake
        conv = real + jnp.abs(diff)
        k_new = jnp.clip(k + lambda_k * diff, 0.0, 1.0) if update_k else k
        return k_new, conv

    rk = jnp.float32(0.0)
    rk, rconv0 = ref_step(real_dloss, fake_dloss, rk, 0.001, 1.0, False)
    rk, rconv1 = ref_step(real_dloss, fake_dloss, rk, 0.001, 1.0, True)
    rk, rconv2 = ref_step(fake_dloss, real_dloss, rk, 0.001, 1.0, True)

    assert jnp.allclose(convergence0, rconv0, atol=1e-6)
    assert jnp.allclose(convergence1, rconv1, atol=1e-6)
    assert jnp.allclose(convergence2, rconv2, atol=1e-6)
    assert jnp.allclose(k0, 0.0, atol=1e-6)          # no update on first call
    assert jnp.allclose(recorder.k, rk, atol=1e-6)   # final carried k matches

    # host readback only here, as one would for logging
    assert abs(float(recorder.k) - float(rk)) < 1e-6

    print("KERNEL_OK")
</pallas_src>

<mosaic_0001>
module attributes {stable_mosaic.version = 11 : i64} {
  func.func @kernel(%arg0: memref<1xf32, #tpu.memory_space<smem>>, %arg1: memref<1xf32, #tpu.memory_space<smem>>, %arg2: memref<1xf32, #tpu.memory_space<smem>>) attributes {dimension_semantics = [], scalar_prefetch = 0 : i64, scratch_operands = 0 : i64, tpu.core_type = #tpu.core_type<tc>} {
    %c0 = arith.constant 0 : index
    %0 = memref.load %arg0[%c0] : memref<1xf32, #tpu.memory_space<smem>>
    %cst = arith.constant 1.000000e+00 : f32
    %1 = arith.mulf %cst, %0 : f32
    %c0_0 = arith.constant 0 : index
    %2 = memref.load %arg1[%c0_0] : memref<1xf32, #tpu.memory_space<smem>>
    %3 = arith.subf %1, %2 : f32
    %4 = math.absf %3 : f32
    %5 = arith.addf %0, %4 : f32
    %c0_1 = arith.constant 0 : index
    %6 = memref.load %arg2[%c0_1] : memref<1xf32, #tpu.memory_space<smem>>
    memref.store %5, %arg2[%c0_1] : memref<1xf32, #tpu.memory_space<smem>>
    return
  }
}

</mosaic_0001>

<bundles_post_ra>
// kernel: step.1
= control target key start
LH: loop header
LB: loop body
LE: loop exit
PB: predicated region body
PF: predicated region fallthrough
CT: control target
= control target key end

     0   :  { %9 = vsyncpa [#allocation5], 0  ;;  %s45_s18 = smov [#allocation4]   ;;  %s73_s0 = inlined_call_operand.<no memory space> [shape: f32[1], index: 0, kind: input, shape index: {}]   ;;  %s74_s1 = inlined_call_operand.<no memory space> [shape: f32[1], index: 1, kind: input, shape index: {}]   ;;  %s75_s2 = inlined_call_operand.hbm [shape: f32[1], index: 2, kind: output, shape index: {}]  }
   0x1   :  { %s16_s13 = ssub.f32 %s73_s0, %s74_s1 }
   0x3   :  { %s17_s14 = sand.u32 2147483647, %s16_s13 }
   0x4   :  { %s18_s17 = sadd.f32 %s17_s14, %s73_s0 }
   0x6   :  { %20 = sst [smem:[#allocation4]] %s18_s17 }
   0x7   :  { %28 = dma.smem_to_hbm %s45_s18, 16, %s75_s2, [#allocation5]  }
   0x8   :  { %43 = dma.done.wait [#allocation5], 16  }
   0x9   :  { %44 = vsyncadd [#allocation5], 4294967280 }
   0xa   :  { %32 = sfence }
   0xb   :  { %33 = vsyncpa [#allocation5], 1 }

</bundles_post_ra>
